<compile_context>
chip_gen: v5e
topology: v5e:2x2
jax: 0.10.0
libtpu: 0.0.40
codegen_flags: <defaults>
</compile_context>

<pallas_src>
import functools

import jax
import jax.numpy as jnp
from jax.experimental import pallas as pl
from jax.experimental.pallas import tpu as pltpu

# ---- small synthetic sizes ------------------------------------------------
B = 2        # batch
Nq = 8       # qformer query tokens (number of image-placeholder positions)
Dq = 32      # qformer hidden size
Dh = 64      # language-model hidden size
L = 16       # sequence length of input_ids (pre + Nq bos placeholders + post)
V = 128      # vocab size (lane-dense logits output)
BOS_ID = 1
PAD_ID = 0
IGNORE = -100


def _default_grid_b():
    """Batch grid steps: 2 on v7x (2 TensorCores/chip), else 1 (fold batch).

    v5e/v6e have a single TensorCore, so the whole batch is folded into one
    grid step (per-step overhead dominates at these toy sizes); on v7x a
    size-2 "parallel" axis is what lets both TCs do work.
    """
    try:
        kind = jax.devices()[0].device_kind.lower()
    except Exception:
        kind = ""
    if ("v7" in kind or "7x" in kind) and B % 2 == 0:
        return 2
    return 1


# ---------------------------------------------------------------------------
# Fused kernel: one grid step handles `bb` batch rows folded into matmul M.
#   1) lang_projection:  img = q @ proj_w + proj_b              (MXU, bf16)
#   2) embedding lookup (one-hot matmul, V small) + in-register splice of the
#      projected image embeddings into the BOS span (placement one-hot matmul
#      + row-mask select; no VMEM scratch, no dynamic masked stores).
#   3) tied LM-head surrogate: logits = x @ emb_table^T (NT dot_general).
# ---------------------------------------------------------------------------
def _gpt4_fused_kernel(bb,
                       start_ref,                              # scalar prefetch (SMEM)
                       ids_ref, q_ref, pw_ref, pb_ref, emb_ref,
                       logit_ref):
    g = pl.program_id(0)

    # ---- 1) lang_projection: (bb*Nq, Dq) @ (Dq, Dh) + bias, f32 acc -------
    img = (jnp.dot(q_ref[...], pw_ref[...],
                   preferred_element_type=jnp.float32)
           + pb_ref[...])                                      # (bb*Nq, Dh) f32

    # ---- 2) token embedding via one-hot matmul (fine while V = 128) -------
    # TODO(synk): at real vocab sizes replace with a scalar-prefetched DMA
    # row-gather on emb_table (pl.Element / make_async_copy), O(L*Dh) bytes
    # instead of O(L*V*Dh) MXU work and no full emb_table resident in VMEM.
    tok = ids_ref[...]                                         # (bb*L, 1) int32
    vio = jax.lax.broadcasted_iota(jnp.int32, (bb * L, V), 1)
    onehot = (vio == tok).astype(jnp.bfloat16)                 # (bb*L, V)
    x = jnp.dot(onehot, emb_ref[...],
                preferred_element_type=jnp.float32)            # (bb*L, Dh) f32

    # ---- splice image embeddings into the BOS span, fully in vregs --------
    # Placement one-hot P[i, k] = 1 iff output row i receives img row k, then
    # x = where(in_span, P @ img, text).  No VMEM round trip, no width-1 /
    # dynamic masked sublane stores; MXU op is (bb*L, bb*Nq)@(bb*Nq, Dh).
    ri = jax.lax.broadcasted_iota(jnp.int32, (bb * L, bb * Nq), 0)
    ci = jax.lax.broadcasted_iota(jnp.int32, (bb * L, bb * Nq), 1)
    ri1 = jax.lax.broadcasted_iota(jnp.int32, (bb * L, 1), 0)
    place = jnp.zeros((bb * L, bb * Nq), jnp.bool_)
    span = jnp.zeros((bb * L, 1), jnp.bool_)
    for r in range(bb):                                        # static unroll (bb <= 2)
        start = start_ref[g * bb + r]                          # clamped in wrapper
        base = r * L + start
        in_cols = (ci >= r * Nq) & (ci < (r + 1) * Nq)
        place = place | (in_cols & (ri == base + (ci - r * Nq)))
        span = span | ((ri1 >= base) & (ri1 < base + Nq))
    placed = jnp.dot(place.astype(jnp.bfloat16), img.astype(jnp.bfloat16),
                     preferred_element_type=jnp.float32)       # (bb*L, Dh) f32
    x = jnp.where(span, placed, x)

    # ---- 3) tied LM-head surrogate: logits = x @ emb_table^T --------------
    # TODO(synk): the frozen pretrained HF lang_model transformer stack (and
    # its .generate path) has no clean Pallas equivalent; a tied-embedding
    # linear head stands in.  emb_table is reused (no separate head_w copy).
    logits = jax.lax.dot_general(
        x.astype(jnp.bfloat16), emb_ref[...],
        dimension_numbers=(((1,), (1,)), ((), ())),            # (M,K)·(N,K)->(M,N)
        preferred_element_type=jnp.float32)                    # (bb*L, V)
    logit_ref[...] = logits                                    # lane-dense (V = 128)


def gpt4_fused(img_starts, input_ids, query_output, proj_w, proj_b, emb_table,
               *, grid_b):
    assert B % grid_b == 0
    bb = B // grid_b
    ids2 = input_ids.reshape(B * L, 1).astype(jnp.int32)
    q2 = query_output.reshape(B * Nq, Dq).astype(jnp.bfloat16)

    logits = pl.pallas_call(
        functools.partial(_gpt4_fused_kernel, bb),
        out_shape=jax.ShapeDtypeStruct((B * L, V), jnp.float32),
        grid_spec=pltpu.PrefetchScalarGridSpec(
            num_scalar_prefetch=1,
            grid=(grid_b,),
            in_specs=[
                pl.BlockSpec((bb * L, 1), lambda g, st: (g, 0)),    # input_ids
                pl.BlockSpec((bb * Nq, Dq), lambda g, st: (g, 0)),  # qformer out (bf16)
                pl.BlockSpec((Dq, Dh), lambda g, st: (0, 0)),       # proj_w (bf16)
                pl.BlockSpec((1, Dh), lambda g, st: (0, 0)),        # proj_b (f32)
                pl.BlockSpec((V, Dh), lambda g, st: (0, 0)),        # emb_table (bf16, tied head)
            ],
            out_specs=pl.BlockSpec((bb * L, V), lambda g, st: (g, 0)),
        ),
        compiler_params=pltpu.CompilerParams(
            dimension_semantics=("parallel",)),                 # v7x: 2 TCs over batch
    )(img_starts, ids2, q2, proj_w, proj_b, emb_table)
    return logits.reshape(B, L, V)


# ---------------------------------------------------------------------------
# Forward pass mirroring Gpt4Model.forward (run_type == 'train')
# ---------------------------------------------------------------------------
def gpt4_forward(params, inputs, *, grid_b=None):
    if grid_b is None:
        grid_b = _default_grid_b()

    # TODO(synk): the frozen pretrained BLIP-2 vision encoder + qformer cannot
    # be reproduced; its output (query_output) is taken directly as an input.
    query_output = inputs["qformer_query_output"]

    input_ids = inputs["src"]["input_ids"]
    attention_mask = inputs["src"]["attention_mask"]
    assert attention_mask.shape[1] == L   # spliced embeds keep length L

    # first BOS position per batch element == (input_id == bos_id).nonzero()[0]
    img_starts = jnp.argmax((input_ids == BOS_ID).astype(jnp.int32),
                            axis=1).astype(jnp.int32)
    img_starts = jnp.clip(img_starts, 0, L - Nq)   # guard start + Nq <= L

    labels = jnp.where(inputs["tgt_inp_ids"] == PAD_ID, IGNORE,
                       inputs["tgt_inp_ids"])

    logits = gpt4_fused(img_starts, input_ids, query_output,
                        params["proj_w"], params["proj_b"],
                        params["emb_table"], grid_b=grid_b)

    # argmax + masked CE computed in JAX from the lane-dense logits output
    # (the kernel no longer stores lane-width-1 gen/loss columns).
    gen_ids = jnp.argmax(logits, axis=-1).astype(jnp.int32)
    # TODO(synk): no causal label shift is applied (HF CausalLM shifts
    # internally); the surrogate head keeps logits[t] vs labels[t] alignment.
    lse = jax.nn.logsumexp(logits, axis=-1)
    picked = jnp.take_along_axis(
        logits, jnp.clip(labels, 0, V - 1)[..., None], axis=-1)[..., 0]
    valid = labels != IGNORE
    tok_loss = jnp.where(valid, lse - picked, 0.0)
    loss = jnp.sum(tok_loss) / jnp.maximum(
        jnp.sum(valid).astype(jnp.float32), 1.0)
    return {"loss": loss, "gen_ids": gen_ids, "logits": logits}


if __name__ == "__main__":
    key = jax.random.PRNGKey(0)
    k1, k2, k3, k4, k5, k6 = jax.random.split(key, 6)

    # frozen weights in bf16 (MXU-native), projection bias kept f32
    emb_table = (jax.random.normal(k1, (V, Dh), jnp.float32) * 0.02
                 ).astype(jnp.bfloat16)
    params = {
        "emb_table": emb_table,                                  # frozen LM embeddings + tied head
        "proj_w": (jax.random.normal(k2, (Dq, Dh), jnp.float32) * 0.01
                   ).astype(jnp.bfloat16),                       # lang_projection
        "proj_b": (jax.random.normal(k3, (Dh,), jnp.float32) * 0.01
                   ).reshape(1, Dh),
    }

    # frozen BLIP-2 qformer output features
    query_output = jax.random.normal(k4, (B, Nq, Dq), jnp.float32)

    # input_ids with exactly Nq contiguous BOS placeholders per row
    text_ids = jax.random.randint(k5, (B, L), 2, V, dtype=jnp.int32)
    starts = jnp.array([2, 5], dtype=jnp.int32)
    pos = jnp.arange(L)[None, :]
    in_img = (pos >= starts[:, None]) & (pos < starts[:, None] + Nq)
    input_ids = jnp.where(in_img, BOS_ID, text_ids)
    attention_mask = jnp.ones((B, L), jnp.int32)

    tgt_inp_ids = jax.random.randint(k6, (B, L), 2, V, dtype=jnp.int32)
    tgt_inp_ids = tgt_inp_ids.at[:, -3:].set(PAD_ID)  # trailing pads -> -100

    inputs = {
        "qformer_query_output": query_output,
        "src": {"input_ids": input_ids, "attention_mask": attention_mask},
        "tgt_inp_ids": tgt_inp_ids,
    }

    out = gpt4_forward(params, inputs)
    jax.block_until_ready(out["loss"])
    jax.block_until_ready(out["gen_ids"])
    jax.block_until_ready(out["logits"])
    print("KERNEL_OK")
</pallas_src>

<mosaic_0001>
module attributes {stable_mosaic.version = 11 : i64} {
  func.func @_gpt4_fused_kernel(%arg0: i32, %arg1: memref<2xi32, #tpu.memory_space<smem>>, %arg2: memref<32x1xi32, #tpu.memory_space<vmem>>, %arg3: memref<16x32xbf16, #tpu.memory_space<vmem>>, %arg4: memref<32x64xbf16, #tpu.memory_space<vmem>>, %arg5: memref<1x64xf32, #tpu.memory_space<vmem>>, %arg6: memref<128x64xbf16, #tpu.memory_space<vmem>>, %arg7: memref<32x128xf32, #tpu.memory_space<vmem>>) attributes {dimension_semantics = [#tpu.dimension_semantics<parallel>], iteration_bounds = array<i64: 1>, scalar_prefetch = 1 : i64, scratch_operands = 0 : i64, tpu.core_type = #tpu.core_type<tc>, window_params = [{transform_indices = @transform_0, window_bounds = array<i64: 32, 1>}, {transform_indices = @transform_1, window_bounds = array<i64: 16, 32>}, {pipeline_mode = #tpu.pipeline_mode<synchronous>, transform_indices = @transform_2, window_bounds = array<i64: 32, 64>}, {pipeline_mode = #tpu.pipeline_mode<synchronous>, transform_indices = @transform_3, window_bounds = array<i64: 1, 64>}, {pipeline_mode = #tpu.pipeline_mode<synchronous>, transform_indices = @transform_4, window_bounds = array<i64: 128, 64>}, {transform_indices = @transform_5, window_bounds = array<i64: 32, 128>}]} {
    %c0 = arith.constant 0 : index
    %c0_0 = arith.constant 0 : index
    %0 = vector.load %arg3[%c0, %c0_0] : memref<16x32xbf16, #tpu.memory_space<vmem>>, vector<16x32xbf16>
    %c0_1 = arith.constant 0 : index
    %c0_2 = arith.constant 0 : index
    %1 = vector.load %arg4[%c0_1, %c0_2] : memref<32x64xbf16, #tpu.memory_space<vmem>>, vector<32x64xbf16>
    %cst = arith.constant dense<0.000000e+00> : vector<16x64xf32>
    %2 = tpu.matmul %0, %1, %cst {dimension_numbers = #tpu.dot_dimension_numbers<[1], [0], [0], [1], [0, 0, 1, 1], [], []>} : vector<16x32xbf16>, vector<32x64xbf16>, vector<16x64xf32> -> vector<16x64xf32>
    %c0_3 = arith.constant 0 : index
    %c0_4 = arith.constant 0 : index
    %3 = vector.load %arg5[%c0_3, %c0_4] : memref<1x64xf32, #tpu.memory_space<vmem>>, vector<1x64xf32>
    %4 = vector.broadcast %3 : vector<1x64xf32> to vector<16x64xf32>
    %5 = arith.addf %2, %4 : vector<16x64xf32>
    %c0_5 = arith.constant 0 : index
    %c0_6 = arith.constant 0 : index
    %6 = vector.load %arg2[%c0_5, %c0_6] : memref<32x1xi32, #tpu.memory_space<vmem>>, vector<32x1xi32>
    %7 = tpu.iota {dimensions = array<i32: 1>} : vector<32x128xi32>
    %8 = vector.broadcast %6 : vector<32x1xi32> to vector<32x128xi32>
    %9 = arith.cmpi eq, %7, %8 : vector<32x128xi32>
    %10 = arith.extui %9 : vector<32x128xi1> to vector<32x128xi32>
    %11 = arith.sitofp %10 : vector<32x128xi32> to vector<32x128xf32>
    %12 = arith.truncf %11 : vector<32x128xf32> to vector<32x128xbf16>
    %c0_7 = arith.constant 0 : index
    %c0_8 = arith.constant 0 : index
    %13 = vector.load %arg6[%c0_7, %c0_8] : memref<128x64xbf16, #tpu.memory_space<vmem>>, vector<128x64xbf16>
    %cst_9 = arith.constant dense<0.000000e+00> : vector<32x64xf32>
    %14 = tpu.matmul %12, %13, %cst_9 {dimension_numbers = #tpu.dot_dimension_numbers<[1], [0], [0], [1], [0, 0, 1, 1], [], []>} : vector<32x128xbf16>, vector<128x64xbf16>, vector<32x64xf32> -> vector<32x64xf32>
    %15 = tpu.iota {dimensions = array<i32: 0>} : vector<32x16xi32>
    %16 = tpu.iota {dimensions = array<i32: 1>} : vector<32x16xi32>
    %17 = tpu.iota {dimensions = array<i32: 0>} : vector<32x1xi32>
    %false = arith.constant false
    %18 = vector.broadcast %false : i1 to vector<32x16xi1>
    %false_10 = arith.constant false
    %19 = vector.broadcast %false_10 : i1 to vector<32x1xi1>
    %c2_i32 = arith.constant 2 : i32
    %20 = arith.muli %arg0, %c2_i32 : i32
    %c0_i32 = arith.constant 0 : i32
    %21 = arith.addi %20, %c0_i32 : i32
    %22 = arith.index_cast %21 : i32 to index
    %23 = memref.load %arg1[%22] : memref<2xi32, #tpu.memory_space<smem>>
    %c0_i32_11 = arith.constant 0 : i32
    %24 = arith.addi %c0_i32_11, %23 : i32
    %c0_i32_12 = arith.constant 0 : i32
    %25 = vector.broadcast %c0_i32_12 : i32 to vector<32x16xi32>
    %26 = arith.cmpi sge, %16, %25 : vector<32x16xi32>
    %c8_i32 = arith.constant 8 : i32
    %27 = vector.broadcast %c8_i32 : i32 to vector<32x16xi32>
    %28 = arith.cmpi slt, %16, %27 : vector<32x16xi32>
    %29 = arith.andi %26, %28 : vector<32x16xi1>
    %c0_i32_13 = arith.constant 0 : i32
    %30 = vector.broadcast %c0_i32_13 : i32 to vector<32x16xi32>
    %31 = arith.subi %16, %30 : vector<32x16xi32>
    %32 = vector.broadcast %24 : i32 to vector<32x16xi32>
    %33 = arith.addi %32, %31 : vector<32x16xi32>
    %34 = arith.cmpi eq, %15, %33 : vector<32x16xi32>
    %35 = arith.andi %29, %34 : vector<32x16xi1>
    %36 = arith.ori %18, %35 : vector<32x16xi1>
    %37 = vector.broadcast %24 : i32 to vector<32x1xi32>
    %38 = arith.cmpi sge, %17, %37 : vector<32x1xi32>
    %c8_i32_14 = arith.constant 8 : i32
    %39 = arith.addi %24, %c8_i32_14 : i32
    %40 = vector.broadcast %39 : i32 to vector<32x1xi32>
    %41 = arith.cmpi slt, %17, %40 : vector<32x1xi32>
    %42 = arith.andi %38, %41 : vector<32x1xi1>
    %43 = arith.ori %19, %42 : vector<32x1xi1>
    %c2_i32_15 = arith.constant 2 : i32
    %44 = arith.muli %arg0, %c2_i32_15 : i32
    %c1_i32 = arith.constant 1 : i32
    %45 = arith.addi %44, %c1_i32 : i32
    %46 = arith.index_cast %45 : i32 to index
    %47 = memref.load %arg1[%46] : memref<2xi32, #tpu.memory_space<smem>>
    %c16_i32 = arith.constant 16 : i32
    %48 = arith.addi %c16_i32, %47 : i32
    %c8_i32_16 = arith.constant 8 : i32
    %49 = vector.broadcast %c8_i32_16 : i32 to vector<32x16xi32>
    %50 = arith.cmpi sge, %16, %49 : vector<32x16xi32>
    %c16_i32_17 = arith.constant 16 : i32
    %51 = vector.broadcast %c16_i32_17 : i32 to vector<32x16xi32>
    %52 = arith.cmpi slt, %16, %51 : vector<32x16xi32>
    %53 = arith.andi %50, %52 : vector<32x16xi1>
    %c8_i32_18 = arith.constant 8 : i32
    %54 = vector.broadcast %c8_i32_18 : i32 to vector<32x16xi32>
    %55 = arith.subi %16, %54 : vector<32x16xi32>
    %56 = vector.broadcast %48 : i32 to vector<32x16xi32>
    %57 = arith.addi %56, %55 : vector<32x16xi32>
    %58 = arith.cmpi eq, %15, %57 : vector<32x16xi32>
    %59 = arith.andi %53, %58 : vector<32x16xi1>
    %60 = arith.ori %36, %59 : vector<32x16xi1>
    %61 = vector.broadcast %48 : i32 to vector<32x1xi32>
    %62 = arith.cmpi sge, %17, %61 : vector<32x1xi32>
    %c8_i32_19 = arith.constant 8 : i32
    %63 = arith.addi %48, %c8_i32_19 : i32
    %64 = vector.broadcast %63 : i32 to vector<32x1xi32>
    %65 = arith.cmpi slt, %17, %64 : vector<32x1xi32>
    %66 = arith.andi %62, %65 : vector<32x1xi1>
    %67 = arith.ori %43, %66 : vector<32x1xi1>
    %68 = arith.extui %60 : vector<32x16xi1> to vector<32x16xi32>
    %69 = arith.sitofp %68 : vector<32x16xi32> to vector<32x16xf32>
    %70 = arith.truncf %69 : vector<32x16xf32> to vector<32x16xbf16>
    %71 = arith.truncf %5 : vector<16x64xf32> to vector<16x64xbf16>
    %cst_20 = arith.constant dense<0.000000e+00> : vector<32x64xf32>
    %72 = tpu.matmul %70, %71, %cst_20 {dimension_numbers = #tpu.dot_dimension_numbers<[1], [0], [0], [1], [0, 0, 1, 1], [], []>} : vector<32x16xbf16>, vector<16x64xbf16>, vector<32x64xf32> -> vector<32x64xf32>
    %73 = vector.shape_cast %67 : vector<32x1xi1> to vector<32x1xi1>
    %74 = vector.broadcast %73 : vector<32x1xi1> to vector<32x64xi1>
    %75 = arith.select %74, %72, %14 : vector<32x64xi1>, vector<32x64xf32>
    %76 = arith.truncf %75 : vector<32x64xf32> to vector<32x64xbf16>
    %c0_21 = arith.constant 0 : index
    %c0_22 = arith.constant 0 : index
    %77 = vector.load %arg6[%c0_21, %c0_22] : memref<128x64xbf16, #tpu.memory_space<vmem>>, vector<128x64xbf16>
    %cst_23 = arith.constant dense<0.000000e+00> : vector<32x128xf32>
    %78 = tpu.matmul %76, %77, %cst_23 {dimension_numbers = #tpu.dot_dimension_numbers<[1], [1], [0], [0], [0, 0, 1, 0], [], []>} : vector<32x64xbf16>, vector<128x64xbf16>, vector<32x128xf32> -> vector<32x128xf32>
    %c0_24 = arith.constant 0 : index
    %c0_25 = arith.constant 0 : index
    %79 = vector.load %arg7[%c0_24, %c0_25] : memref<32x128xf32, #tpu.memory_space<vmem>>, vector<32x128xf32>
    tpu.vector_store %arg7[%c0_24, %c0_25], %78 {strides = array<i32>} : memref<32x128xf32, #tpu.memory_space<vmem>>, vector<32x128xf32>,
    return
  }
  func.func @transform_0(%arg0: i32, %arg1: memref<2xi32, #tpu.memory_space<smem>>) -> (i32, i32) {
    %c0_i32 = arith.constant 0 : i32
    %c0_i32_0 = arith.constant 0 : i32
    return %arg0, %c0_i32 : i32, i32
  }
  func.func @transform_1(%arg0: i32, %arg1: memref<2xi32, #tpu.memory_space<smem>>) -> (i32, i32) {
    %c0_i32 = arith.constant 0 : i32
    %c0_i32_0 = arith.constant 0 : i32
    return %arg0, %c0_i32 : i32, i32
  }
  func.func @transform_2(%arg0: i32, %arg1: memref<2xi32, #tpu.memory_space<smem>>) -> (i32, i32) {
    %c0_i32 = arith.constant 0 : i32
    %c0_i32_0 = arith.constant 0 : i32
    %c0_i32_1 = arith.constant 0 : i32
    return %c0_i32, %c0_i32_0 : i32, i32
  }
  func.func @transform_3(%arg0: i32, %arg1: memref<2xi32, #tpu.memory_space<smem>>) -> (i32, i32) {
    %c0_i32 = arith.constant 0 : i32
    %c0_i32_0 = arith.constant 0 : i32
    %c0_i32_1 = arith.constant 0 : i32
    return %c0_i32, %c0_i32_0 : i32, i32
  }
  func.func @transform_4(%arg0: i32, %arg1: memref<2xi32, #tpu.memory_space<smem>>) -> (i32, i32) {
    %c0_i32 = arith.constant 0 : i32
    %c0_i32_0 = arith.constant 0 : i32
    %c0_i32_1 = arith.constant 0 : i32
    return %c0_i32, %c0_i32_0 : i32, i32
  }
  func.func @transform_5(%arg0: i32, %arg1: memref<2xi32, #tpu.memory_space<smem>>) -> (i32, i32) {
    %c0_i32 = arith.constant 0 : i32
    %c0_i32_0 = arith.constant 0 : i32
    return %arg0, %c0_i32 : i32, i32
  }
}

</mosaic_0001>

<bundles_post_ra>
// kernel: tpu_custom_call.1
= control target key start
LH: loop header
LB: loop body
LE: loop exit
PB: predicated region body
PF: predicated region fallthrough
CT: control target
= control target key end

     0   :  { %s519_s24 = smov [#allocation3]   ;;  %s755_s0 = inlined_call_operand.vmem [shape: s32[2], index: 0, kind: input, shape index: {}]   ;;  %s756_s1 = inlined_call_operand.vmem [shape: s32[32,1], index: 1, kind: input, shape index: {}]   ;;  %s757_s2 = inlined_call_operand.vmem [shape: bf16[16,32], index: 2, kind: input, shape index: {}]   ;;  %s758_s3 = inlined_call_operand.vmem [shape: bf16[32,64], index: 3, kind: input, shape index: {}]   ;;  %s759_s4 = inlined_call_operand.vmem [shape: f32[1,64], index: 4, kind: input, shape index: {}]   ;;  %s760_s5 = inlined_call_operand.vmem [shape: bf16[128,64], index: 5, kind: input, shape index: {}]   ;;  %s761_s6 = inlined_call_operand.hbm [shape: f32[32,128], index: 6, kind: output, shape index: {}]  }
   0x1   :  { %s12_s23 = sshll.u32 %s755_s0, 4  ;;  %s13_s23 = int_to_ptr.vmem [resolvable:$true] %s12_s23 }
   0x2   :  { %15 = dma.vmem_to_smem %s13_s23, 16, %s519_s24, [#allocation2] }
   0x3   :  { %515 = dma.done.wait [#allocation2], 16 }
   0x4   :  { %516 = vsyncadd [#allocation2], 4294967280 }
   0x5   :  { %18 = sfence }
   0x6   :  { %v452_v0 = vld [vmem:[%s758_s3 + $0x8] sm:$0xff]  ;;  %v520_v1 = vmov 0   ;;  %v76_v2 = vld [vmem:[%s756_s1] sm:$0xff]  ;;  %v78_v3 = vld [vmem:[%s756_s1 + $0x10] sm:$0xff] }
   0x7   :  { %476 = vset.pattern.permute.xlu0 %v520_v1  ;;  %477 = vset.pattern.permute.xlu1 %v520_v1  ;;  %v451_v4 = vld [vmem:[%s758_s3] sm:$0xff]  ;;  %v460_v5 = vld [vmem:[%s760_s5 + $0x38] sm:$0xff]  ;;  %v582_v6 = vld [vmem:[%s760_s5 + $0x30] sm:$0xff] }
   0x8   :  { %68 = vmatpush.bf16.msra.mxu2 %v452_v0  ;;  %83 = vperm.xlu0 %476, %v76_v2  }
   0x9   :  { %89 = vperm.xlu1 %477, %v78_v3   ;;  %172 = vmatpush.bf16.msra.mxu1 %v460_v5 }
   0xa   :  { %19 = vsyncpa [#allocation5], 0  ;;  %v450_v7 = vld [vmem:[%s757_s2] sm:$0xff]  ;;  %vm58_vm0 = vcmask 261120   ;;  %v77_v8 = vld [vmem:[%s756_s1 + $0x8] sm:$0xff]  ;;  %v80_v16 = vlaneseq  ;;  %s632_s27 = sld [smem:[#allocation3 + $0x1]] }
   0xb   :  { %v79_v9 = vld [vmem:[%s756_s1 + $0x18] sm:$0xff]  ;;  %v597_v10 = vld [vmem:[%s760_s5 + $0x28] sm:$0xff]  ;;  %v603_v11 = vld [vmem:[%s760_s5 + $0x20] sm:$0xff]  ;;  %s634_s28 = sld [smem:[#allocation3]]  ;;  %v521_v21 = vmov 1.0|1.0  }
   0xc   :  { %69 = vmatpush.bf16.msra.mxu2 %v451_v4  ;;  %v609_v12 = vld [vmem:[%s760_s5 + $0x18] sm:$0xff]  ;;  %v615_v13 = vld [vmem:[%s760_s5 + $0x10] sm:$0xff]  ;;  %v621_v14 = vld [vmem:[%s760_s5 + $0x8] sm:$0xff]  ;;  %v630_v18 = vand.u32 127, %v80_v16  ;;  %v642_v23 = vshrl.u32 %v80_v16, 7  ;;  %v522_v38 = vmov 0.0  }
   0xd   :  { %173 = vmatpush.bf16.msra.mxu1 %v582_v6  ;;  %v627_v15 = vld [vmem:[%s760_s5] sm:$0xff]  ;;  %s523_s7 = smov [#allocation4]   ;;  %s375_s11 = sshll.u32 %s761_s6, 4  ;;  %s376_s11 = int_to_ptr.hbm [resolvable:$true] %s375_s11 }
   0xe   :  { %v441_v24 = vadd.s32 4294967288, %v630_v18  ;;  %v650_v27 = vadd.s32 8, %v642_v23  ;;  %vm228_vm4 = vcmp.ge.s32.totalorder %v630_v18, 8  ;;  %vm229_vm5 = vcmp.lt.s32.totalorder %v630_v18, 16  ;;  %v478_v35 = vld [vmem:[%s759_s4] ss:$0 sm:$0xff] }
   0xf   :  { %399 = vmatmul.msk.bf16.vlgmr.msra.gmra.mxu2 %vm58_vm0, %v450_v7  ;;  %vm199_vm6 = vcmp.lt.s32.totalorder %v630_v18, 8  ;;  %vm660_vm11 = vmand %vm228_vm4, %vm229_vm5  ;;  %vm315_vm0 = vcmask 523264   ;;  %v693_v43 = vadd.s32 16, %v642_v23  ;;  %v696_v44 = vadd.s32 24, %v642_v23  ;;  %s373_s8 = sshll.u32 %s523_s7, 4  ;;  %s524_s12 = smov 128   ;;  %s374_s8 = int_to_ptr.vmem [resolvable:$true] %s373_s8 }
  0x10   :  { %86 = vperm.xlu0 %476, %v77_v8   ;;  %s227_s5 = sadd.s32 16, %s632_s27  ;;  %v344_v34 = vsel %vm315_vm0, %v460_v5, 0  ;;  %v341_v36 = vsel %vm315_vm0, %v582_v6, 0  ;;  %v338_v47 = vsel %vm315_vm0, %v597_v10, 0  ;;  %v335_v48 = vsel %vm315_vm0, %v603_v11, 0  ;;  %s250_s0 = sadd.s32 24, %s632_s27 }
  0x11   :  { %92 = vperm.xlu1 %477, %v79_v9   ;;  %174 = vmatpush.bf16.msra.mxu1 %v597_v10  ;;  %v639_v22 = vstv %s634_s28  ;;  %v647_v26 = vstv %s227_s5  ;;  %v332_v52 = vsel %vm315_vm0, %v609_v12, 0  ;;  %v329_v53 = vsel %vm315_vm0, %v615_v13, 0  ;;  %s215_s4 = sadd.s32 8, %s634_s28  ;;  %s525_s13 = smov 8  }
  0x12   :  { %v202_v25 = vadd.s32 %v639_v22, %v630_v18  ;;  %v233_v29 = vadd.s32 %v441_v24, %v647_v26  ;;  %346 = vmatpush.bf16.xpose.msra.mxu0 %v344_v34  ;;  %461 = vmatpush.bf16.xpose.msra.mxu3 %v344_v34  ;;  %v326_v54 = vsel %vm315_vm0, %v621_v14, 0  ;;  %v323_v55 = vsel %vm315_vm0, %v627_v15, 0 }
  0x13   :  { %v216_v57 = vstv %s215_s4  ;;  %v251_v58 = vstv %s250_s0 }
  0x14   :  { %vm203_vm7 = vcmp.eq.s32.totalorder %v642_v23, %v202_v25  ;;  %vm204_vm10 = vcmp.eq.s32.totalorder %v650_v27, %v202_v25  ;;  %vm234_vm13 = vcmp.eq.s32.totalorder %v642_v23, %v233_v29  ;;  %vm235_vm14 = vcmp.eq.s32.totalorder %v650_v27, %v233_v29 }
  0x15   :  { %175 = vmatpush.bf16.msra.mxu1 %v603_v11  ;;  %vm666_vm12 = vmand %vm199_vm6, %vm203_vm7  ;;  %vm275_vm7 = vcmask 130048  }
  0x19   :  { %176 = vmatpush.bf16.msra.mxu1 %v609_v12 }
  0x1a   :  { %347 = vmatpush.bf16.xpose.msra.mxu0 %v341_v36  ;;  %462 = vmatpush.bf16.xpose.msra.mxu3 %v341_v36 }
  0x1d   :  { %177 = vmatpush.bf16.msra.mxu1 %v615_v13 }
  0x21   :  { %178 = vmatpush.bf16.msra.mxu1 %v621_v14 }
  0x22   :  { %348 = vmatpush.bf16.xpose.msra.mxu0 %v338_v47  ;;  %463 = vmatpush.bf16.xpose.msra.mxu3 %v338_v47 }
  0x25   :  { %179 = vmatpush.bf16.msra.mxu1 %v627_v15 }
  0x2a   :  { %349 = vmatpush.bf16.xpose.msra.mxu0 %v335_v48  ;;  %464 = vmatpush.bf16.xpose.msra.mxu3 %v335_v48 }
  0x32   :  { %350 = vmatpush.bf16.xpose.msra.mxu0 %v332_v52  ;;  %465 = vmatpush.bf16.xpose.msra.mxu3 %v332_v52 }
  0x3a   :  { %351 = vmatpush.bf16.xpose.msra.mxu0 %v329_v53  ;;  %466 = vmatpush.bf16.xpose.msra.mxu3 %v329_v53 }
  0x42   :  { %352 = vmatpush.bf16.xpose.msra.mxu0 %v326_v54  ;;  %467 = vmatpush.bf16.xpose.msra.mxu3 %v326_v54 }
  0x4a   :  { %353 = vmatpush.bf16.xpose.msra.mxu0 %v323_v55  ;;  %468 = vmatpush.bf16.xpose.msra.mxu3 %v323_v55 }
  0x7a   :  { %v84_v17 = vpop.permute.xlu0 %83 }
  0x7b   :  { %vm94_vm1 = vcmp.eq.s32.totalorder %v630_v18, %v84_v17  ;;  %v90_v20 = vpop.permute.xlu1 %89 }
  0x7c   :  { %vm96_vm8 = vcmp.eq.s32.totalorder %v630_v18, %v90_v20 }
  0x82   :  { %v87_v19 = vpop.permute.xlu0 %86 }
  0x83   :  { %vm95_vm2 = vcmp.eq.s32.totalorder %v630_v18, %v87_v19  ;;  %v93_v28 = vpop.permute.xlu1 %92 }
  0x84   :  { %vm436_vm3 = vmpackc.low %vm95_vm2, %vm94_vm1  ;;  %vm97_vm9 = vcmp.eq.s32.totalorder %v630_v18, %v93_v28 }
  0x85   :  { %437 = vmatmul.msk.bf16.vlgmr.msra.gmra.mxu1 %vm436_vm3, %v521_v21  ;;  %vm438_vm15 = vmpackc.low %vm97_vm9, %vm96_vm8  ;;  %vm205_vm8 = vcmp.eq.s32.totalorder %v693_v43, %v202_v25  ;;  %vm206_vm9 = vcmp.eq.s32.totalorder %v696_v44, %v202_v25 }
  0x86   :  { %vm674_vm1 = vmand %vm199_vm6, %vm204_vm10  ;;  %vm236_vm10 = vcmp.eq.s32.totalorder %v693_v43, %v233_v29 }
  0x87   :  { %vm238_vm2 = vmand %vm660_vm11, %vm234_vm13  ;;  %vm237_vm13 = vcmp.eq.s32.totalorder %v696_v44, %v233_v29 }
  0x88   :  { %vm239_vm3 = vmand %vm660_vm11, %vm235_vm14 }
  0x89   :  { %vm242_vm4 = vmor %vm666_vm12, %vm238_vm2 }
  0x8a   :  { %vm243_vm5 = vmor %vm674_vm1, %vm239_vm3  ;;  %v442_v39 = vsel %vm242_vm4, 1.0, %v522_v38  ;;  %vm246_vm4 = vcmp.ge.s32.totalorder %v642_v23, %v647_v26 }
  0x8b   :  { %v443_v42 = vsel %vm243_vm5, 1.0, %v522_v38  ;;  %vm209_vm12 = vmand %vm199_vm6, %vm205_vm8  ;;  %vm252_vm5 = vcmp.lt.s32.totalorder %v642_v23, %v251_v58  ;;  %vm218_vm8 = vcmp.lt.s32.totalorder %v650_v27, %v216_v57 }
  0x8c   :  { %v272_v46 = vpack.c.bf16 %v443_v42, %v442_v39  ;;  %vm210_vm14 = vmand %vm199_vm6, %vm206_vm9  ;;  %vm211_vm6 = vcmp.ge.s32.totalorder %v642_v23, %v639_v22 }
  0x8d   :  { %vm241_vm1 = vmand %vm660_vm11, %vm237_vm13 }
  0x8e   :  { %vm245_vm3 = vmor %vm210_vm14, %vm241_vm1 }
  0x8f   :  { %v445_v50 = vsel %vm245_vm3, 1.0, %v522_v38  ;;  %vm256_vm13 = vmand %vm246_vm4, %vm252_vm5  ;;  %vm213_vm3 = vcmp.ge.s32.totalorder %v693_v43, %v639_v22  ;;  %vm254_vm4 = vcmp.lt.s32.totalorder %v693_v43, %v251_v58  ;;  %vm214_vm5 = vcmp.ge.s32.totalorder %v696_v44, %v639_v22 }
  0x92   :  { %v71_v32 = vpop.f32.mrf.mxu2 }
  0x93   :  { %v72_v40 = vadd.f32 %v478_v35, %v71_v32 }
  0x95   :  { %439 = vmatmul.msk.bf16.gmra.mxu1 %vm438_vm15, %v521_v21  ;;  %vm240_vm15 = vmand %vm660_vm11, %vm236_vm10  ;;  %vm217_vm11 = vcmp.lt.s32.totalorder %v642_v23, %v216_v57  ;;  %vm247_vm10 = vcmp.ge.s32.totalorder %v650_v27, %v647_v26 }
  0x96   :  { %vm244_vm2 = vmor %vm209_vm12, %vm240_vm15  ;;  %vm253_vm12 = vcmp.lt.s32.totalorder %v650_v27, %v251_v58 }
  0x97   :  { %v444_v49 = vsel %vm244_vm2, 1.0, %v522_v38  ;;  %vm221_vm9 = vmand %vm211_vm6, %vm217_vm11  ;;  %vm219_vm6 = vcmp.lt.s32.totalorder %v693_v43, %v216_v57  ;;  %vm248_vm11 = vcmp.ge.s32.totalorder %v693_v43, %v647_v26 }
  0x98   :  { %v273_v51 = vpack.c.bf16 %v445_v50, %v444_v49  ;;  %vm257_vm15 = vmand %vm247_vm10, %vm253_vm12  ;;  %vm255_vm10 = vcmp.lt.s32.totalorder %v696_v44, %v251_v58 }
  0x99   :  { %vm260_vm1 = vmor %vm221_vm9, %vm256_vm13  ;;  %vm249_vm9 = vcmp.ge.s32.totalorder %v696_v44, %v647_v26 }
  0x9a   :  { %v73_v37 = vpop.f32.mrf.mxu2  ;;  %vm258_vm12 = vmand %vm248_vm11, %vm254_vm4 }
  0x9b   :  { %v74_v41 = vadd.f32 %v478_v35, %v73_v37 }
  0x9d   :  { %v274_v45 = vpack.c.bf16 %v74_v41, %v72_v40 }
  0x9f   :  { %289 = vmatpush.bf16.msrb.mxu2 %v274_v45 }
  0xa2   :  { %446 = vmatmul.msk.bf16.vlgmr.msrb.gmra.mxu2 %vm275_vm7, %v272_v46 }
  0xb2   :  { %447 = vmatmul.msk.bf16.gmra.mxu2 %vm275_vm7, %v273_v51  ;;  %vm212_vm7 = vcmp.ge.s32.totalorder %v650_v27, %v639_v22 }
  0xb3   :  { %vm222_vm14 = vmand %vm212_vm7, %vm218_vm8  ;;  %vm220_vm7 = vcmp.lt.s32.totalorder %v696_v44, %v216_v57 }
  0xb4   :  { %vm261_vm2 = vmor %vm222_vm14, %vm257_vm15 }
  0xb5   :  { %vm223_vm8 = vmand %vm213_vm3, %vm219_vm6 }
  0xb6   :  { %vm224_vm13 = vmand %vm214_vm5, %vm220_vm7 }
  0xb7   :  { %vm259_vm14 = vmand %vm249_vm9, %vm255_vm10 }
  0xb8   :  { %vm262_vm15 = vmor %vm223_vm8, %vm258_vm12 }
 0x102   :  { %v181_v56 = vpop.f32.mrf.mxu1 }
 0x10a   :  { %v183_v60 = vpop.f32.mrf.mxu1 }
 0x112   :  { %v186_v1 = vpop.f32.mrf.mxu1 }
 0x11a   :  { %v188_v3 = vpop.f32.mrf.mxu1 }
 0x125   :  { %v291_v59 = vpop.f32.mrf.mxu2 }
 0x126   :  { %v309_v62 = vsel %vm260_vm1, %v291_v59, %v181_v56  ;;  %vm263_vm1 = vmor %vm224_vm13, %vm259_vm14 }
 0x12d   :  { %v293_v61 = vpop.f32.mrf.mxu2 }
 0x12e   :  { %v310_v63 = vsel %vm261_vm2, %v293_v61, %v183_v60 }
 0x12f   :  { %v313_v0 = vpack.c.bf16 %v310_v63, %v309_v62 }
 0x131   :  { %448 = vmatmul.msk.bf16.vlgmr.msra.gmra.mxu0 %vm315_vm0, %v313_v0 }
 0x135   :  { %v296_v2 = vpop.f32.mrf.mxu2 }
 0x136   :  { %v311_v5 = vsel %vm262_vm15, %v296_v2, %v186_v1 }
 0x13d   :  { %v298_v4 = vpop.f32.mrf.mxu2 }
 0x13e   :  { %v312_v6 = vsel %vm263_vm1, %v298_v4, %v188_v3 }
 0x13f   :  { %v314_v7 = vpack.c.bf16 %v312_v6, %v311_v5 }
 0x141   :  { %449 = vmatmul.msk.bf16.vlgmr.msra.gmra.mxu3 %vm315_vm0, %v314_v7 }
 0x1ae   :  { %v355_v8 = vpop.f32.mrf.mxu0 }
 0x1af   :  { %365 = vst [vmem:[#allocation4] sm:$0xff] %v355_v8 }
 0x1b6   :  { %v357_v9 = vpop.f32.mrf.mxu0 }
 0x1b7   :  { %366 = vst [vmem:[#allocation4 + $0x8] sm:$0xff] %v357_v9 }
 0x1c4   :  { %v360_v10 = vpop.f32.mrf.mxu3 }
 0x1c5   :  { %367 = vst [vmem:[#allocation4 + $0x10] sm:$0xff] %v360_v10 }
 0x1cc   :  { %v362_v11 = vpop.f32.mrf.mxu3 }
 0x1cd   :  { %368 = vst [vmem:[#allocation4 + $0x18] sm:$0xff] %v362_v11 }
 0x1ce   :  { %381 = dma.vmem_to_hbm [thread:$0]  %s374_s8, 512, %s376_s11, [#allocation5], %s524_s12, %s524_s12, %s525_s13  }
 0x1cf   :  { %517 = dma.done.wait [#allocation5], 512  }
 0x1d0   :  { %518 = vsyncadd [#allocation5], 4294966784 }
 0x1d1   :  { %386 = vsyncpa [#allocation5], 1 }

</bundles_post_ra>
